<compile_context>
chip_gen: v6e
topology: v6e:2x2x1
jax: 0.10.0
libtpu: 0.0.40
codegen_flags: <defaults>
</compile_context>

<pallas_src>
import jax
import jax.numpy as jnp
from jax.experimental import pallas as pl
from jax.experimental.pallas import tpu as pltpu

F = 128  # lane width; all hidden layer dims (n2..n5) must be <= 128


def _round_up(n, m):
    return ((n + m - 1) // m) * m


def net2_kernel(x_ref, w_ref, b_ref, out_ref):
    # x_ref:   [TILE_B, n1_pad]        input rows, features zero-padded to n1_pad
    # w_ref:   [n1_pad + 3*F + 8, F]   W1 | W2 | W3 | W4 | W5-block (row 0 = W5^T)
    # b_ref:   [8, F]                  rows 0..3 = b1..b4 (lane-padded), row 4 lane 0 = b5
    # out_ref: [1, 1, TILE_B]          lane j = sigmoid output of batch row j of this tile
    tile_b, n1_pad = x_ref.shape

    # Weight / bias views (loaded once per tile, aligned static slices).
    w1 = w_ref[0:n1_pad, :]
    w2 = w_ref[n1_pad + 0 * F:n1_pad + 1 * F, :]
    w3 = w_ref[n1_pad + 1 * F:n1_pad + 2 * F, :]
    w4 = w_ref[n1_pad + 2 * F:n1_pad + 3 * F, :]
    w5 = w_ref[n1_pad + 3 * F:n1_pad + 3 * F + 8, :]   # [8, F], row 0 = W5^T, rest zero
    b1 = b_ref[0:1, :]
    b2 = b_ref[1:2, :]
    b3 = b_ref[2:3, :]
    b4 = b_ref[3:4, :]
    b5 = b_ref[4:5, 0:1]                                # [1, 1]

    # Two independent sub-chunks per tile so the scheduler can overlap one chunk's
    # MXU matmuls with the other chunk's tanh/sigmoid (EUP) and relu/bias (VPU).
    n_chunks = 2 if tile_b >= 256 else 1
    cb = tile_b // n_chunks
    for c in range(n_chunks):
        x = x_ref[c * cb:(c + 1) * cb, :]                               # [cb, n1_pad]

        h = jnp.dot(x, w1, preferred_element_type=jnp.float32)          # layer 1
        h = jnp.maximum(h + b1, 0.0)
        h = jnp.dot(h, w2, preferred_element_type=jnp.float32)          # layer 2
        h = jnp.tanh(h + b2)
        h = jnp.dot(h, w3, preferred_element_type=jnp.float32)          # layer 3
        h = jnp.maximum(h + b3, 0.0)
        h = jnp.dot(h, w4, preferred_element_type=jnp.float32)          # layer 4
        h = jnp.tanh(h + b4)

        # Layer 5 (out_features=1): contract the feature dim of h against W5^T so
        # the result lands lane-dense ([1, cb], lane j = batch row j) — no padded
        # output slab, tiny sigmoid, tiny HBM writeback.
        z = jax.lax.dot_general(w5, h, (((1,), (1,)), ((), ())),
                                preferred_element_type=jnp.float32)     # [8, cb]
        z = z[0:1, :] + b5                                              # [1, cb]
        out_ref[:, :, c * cb:(c + 1) * cb] = jax.nn.sigmoid(z).reshape(1, 1, cb)


def pack_params(params):
    """Pack 5 layers of (W[in,out], b[out]) into one weight slab and one bias slab.

    Slab rows: [W1 (n1_pad x F) | W2 (F x F) | W3 | W4 | W5-block (8 x F)], where
    W5 ([n5, 1]) is stored transposed in row 0 of the final 8-row block.  All
    padding is zero, which is exact through relu/tanh.
    """
    assert len(params) == 5
    (w1, b1), (w2, b2), (w3, b3), (w4, b4), (w5, b5) = params
    n1 = w1.shape[0]
    n1_pad = _round_up(max(n1, 8), 8)

    def pad_w(w, rows):
        fi, fo = w.shape
        assert fi <= rows and fo <= F, "layer dims must be <= 128"
        return jnp.zeros((rows, F), jnp.float32).at[:fi, :fo].set(w.astype(jnp.float32))

    assert w5.shape[1] == 1, "final layer must have out_features == 1"
    w5_blk = jnp.zeros((8, F), jnp.float32).at[0, :w5.shape[0]].set(
        w5[:, 0].astype(jnp.float32))
    w_packed = jnp.concatenate(
        [pad_w(w1, n1_pad), pad_w(w2, F), pad_w(w3, F), pad_w(w4, F), w5_blk], axis=0)

    def pad_b(b):
        b = jnp.reshape(b, (-1,)).astype(jnp.float32)
        return jnp.zeros((F,), jnp.float32).at[:b.shape[0]].set(b)

    b_packed = jnp.zeros((8, F), jnp.float32)
    b_packed = b_packed.at[0].set(pad_b(b1)).at[1].set(pad_b(b2))
    b_packed = b_packed.at[2].set(pad_b(b3)).at[3].set(pad_b(b4)).at[4].set(pad_b(b5))
    return w_packed, b_packed, n1_pad


def _choose_tile_b(batch, max_tile_b=1024):
    """Batch tile: multiple of 128 (lane-dense compact output), as large as possible
    up to max_tile_b, preferring >=2 grid steps (v7x: 2 TensorCores) and a padded
    batch tail below ~10% of batch_pad."""
    tile = 128
    while tile * 2 <= max_tile_b:
        nxt = tile * 2
        bp = _round_up(batch, nxt)
        if bp // nxt >= 2 and (bp - batch) * 10 <= bp:
            tile = nxt
        else:
            break
    return tile


def net2_forward(x, params, *, max_tile_b=1024):
    """x: [batch, n1] float32; params: list of 5 (W[in,out], b[out]) arrays."""
    batch, n1 = x.shape
    assert n1 == params[0][0].shape[0]
    w_packed, b_packed, n1_pad = pack_params(params)

    tile_b = _choose_tile_b(batch, max_tile_b)
    batch_pad = _round_up(batch, tile_b)
    n_tiles = batch_pad // tile_b

    # Pad only what tiling requires (batch rows + a few feature lanes to n1_pad),
    # not to a 128-lane slab; skip the pad entirely when shapes already line up.
    if batch_pad == batch and n1_pad == n1:
        xp = x.astype(jnp.float32)
    else:
        xp = jnp.zeros((batch_pad, n1_pad), jnp.float32).at[:batch, :n1].set(x)

    n_w_rows = w_packed.shape[0]

    out = pl.pallas_call(
        net2_kernel,
        out_shape=jax.ShapeDtypeStruct((n_tiles, 1, tile_b), jnp.float32),
        grid=(n_tiles,),
        in_specs=[
            pl.BlockSpec((tile_b, n1_pad), lambda i: (i, 0)),   # x: tiled over batch
            pl.BlockSpec((n_w_rows, F), lambda i: (0, 0)),      # packed weights: VMEM-resident
            pl.BlockSpec((8, F), lambda i: (0, 0)),             # packed biases: VMEM-resident
        ],
        out_specs=pl.BlockSpec((1, 1, tile_b), lambda i: (i, 0, 0)),
        compiler_params=pltpu.CompilerParams(
            dimension_semantics=("parallel",)),
    )(xp, w_packed, b_packed)

    # out[i, 0, j] = result for batch row i*tile_b + j.
    return out.reshape(batch_pad, 1)[:batch]


def xavier_normal(key, fan_in, fan_out):
    # Matches torch.nn.init.xavier_normal_ (gain=1): std = sqrt(2 / (fan_in + fan_out))
    std = jnp.sqrt(2.0 / (fan_in + fan_out))
    return std * jax.random.normal(key, (fan_in, fan_out), dtype=jnp.float32)


def make_params(key, dims):
    # dims = [n1, n2, n3, n4, n5, 1]; weights stored [in, out] (transposed vs nn.Linear)
    params = []
    for i in range(len(dims) - 1):
        key, wk, bk = jax.random.split(key, 3)
        fan_in, fan_out = dims[i], dims[i + 1]
        w = xavier_normal(wk, fan_in, fan_out)
        # PyTorch default Linear bias init: U(-1/sqrt(fan_in), 1/sqrt(fan_in))
        bound = 1.0 / jnp.sqrt(fan_in)
        b = jax.random.uniform(bk, (fan_out,), jnp.float32, -bound, bound)
        params.append((w, b))
    return params


def reference_forward(x, params):
    (w1, b1), (w2, b2), (w3, b3), (w4, b4), (w5, b5) = params
    h = jnp.maximum(x @ w1 + b1, 0.0)
    h = jnp.tanh(h @ w2 + b2)
    h = jnp.maximum(h @ w3 + b3, 0.0)
    h = jnp.tanh(h @ w4 + b4)
    return jax.nn.sigmoid(h @ w5 + b5)


if __name__ == "__main__":
    key = jax.random.PRNGKey(0)
    n1, n2, n3, n4, n5 = 32, 64, 32, 64, 16
    key, xk1, xk2, pk = jax.random.split(key, 4)
    params = make_params(pk, [n1, n2, n3, n4, n5, 1])

    # Small batch: single tile, single chunk, padded-batch path.
    x_small = jax.random.normal(xk1, (8, n1), dtype=jnp.float32)
    out_small = jax.block_until_ready(net2_forward(x_small, params))
    ref_small = reference_forward(x_small, params)
    assert out_small.shape == (8, 1), out_small.shape
    assert jnp.allclose(out_small, ref_small, atol=1e-5, rtol=1e-5), "small-batch mismatch"

    # Larger batch: multi-tile grid + 2-way sub-chunk interleave, no-padding fast path.
    x_big = jax.random.normal(xk2, (512, n1), dtype=jnp.float32)
    out_big = jax.block_until_ready(net2_forward(x_big, params))
    ref_big = reference_forward(x_big, params)
    assert out_big.shape == (512, 1), out_big.shape
    assert jnp.allclose(out_big, ref_big, atol=1e-5, rtol=1e-5), "large-batch mismatch"

    print("KERNEL_OK")
</pallas_src>

<mosaic_0001>
module attributes {stable_mosaic.version = 11 : i64} {
  func.func @net2_kernel(%arg0: i32, %arg1: memref<128x32xf32, #tpu.memory_space<vmem>>, %arg2: memref<424x128xf32, #tpu.memory_space<vmem>>, %arg3: memref<8x128xf32, #tpu.memory_space<vmem>>, %arg4: memref<1x1x128xf32, #tpu.memory_space<vmem>>) attributes {dimension_semantics = [#tpu.dimension_semantics<parallel>], iteration_bounds = array<i64: 1>, scalar_prefetch = 0 : i64, scratch_operands = 0 : i64, tpu.core_type = #tpu.core_type<tc>, window_params = [{transform_indices = @transform_0, window_bounds = array<i64: 128, 32>}, {pipeline_mode = #tpu.pipeline_mode<synchronous>, transform_indices = @transform_1, window_bounds = array<i64: 424, 128>}, {pipeline_mode = #tpu.pipeline_mode<synchronous>, transform_indices = @transform_2, window_bounds = array<i64: 8, 128>}, {transform_indices = @transform_3, window_bounds = array<i64: 1, 1, 128>}]} {
    %c0 = arith.constant 0 : index
    %c0_0 = arith.constant 0 : index
    %0 = vector.load %arg2[%c0, %c0_0] : memref<424x128xf32, #tpu.memory_space<vmem>>, vector<32x128xf32>
    %c32 = arith.constant 32 : index
    %c0_1 = arith.constant 0 : index
    %1 = vector.load %arg2[%c32, %c0_1] : memref<424x128xf32, #tpu.memory_space<vmem>>, vector<128x128xf32>
    %c160 = arith.constant 160 : index
    %c0_2 = arith.constant 0 : index
    %2 = vector.load %arg2[%c160, %c0_2] : memref<424x128xf32, #tpu.memory_space<vmem>>, vector<128x128xf32>
    %c288 = arith.constant 288 : index
    %c0_3 = arith.constant 0 : index
    %3 = vector.load %arg2[%c288, %c0_3] : memref<424x128xf32, #tpu.memory_space<vmem>>, vector<128x128xf32>
    %c416 = arith.constant 416 : index
    %c0_4 = arith.constant 0 : index
    %4 = vector.load %arg2[%c416, %c0_4] : memref<424x128xf32, #tpu.memory_space<vmem>>, vector<8x128xf32>
    %c0_5 = arith.constant 0 : index
    %c0_6 = arith.constant 0 : index
    %5 = vector.load %arg3[%c0_5, %c0_6] : memref<8x128xf32, #tpu.memory_space<vmem>>, vector<1x128xf32>
    %c1 = arith.constant 1 : index
    %c0_7 = arith.constant 0 : index
    %6 = vector.load %arg3[%c1, %c0_7] : memref<8x128xf32, #tpu.memory_space<vmem>>, vector<1x128xf32>
    %c2 = arith.constant 2 : index
    %c0_8 = arith.constant 0 : index
    %7 = vector.load %arg3[%c2, %c0_8] : memref<8x128xf32, #tpu.memory_space<vmem>>, vector<1x128xf32>
    %c3 = arith.constant 3 : index
    %c0_9 = arith.constant 0 : index
    %8 = vector.load %arg3[%c3, %c0_9] : memref<8x128xf32, #tpu.memory_space<vmem>>, vector<1x128xf32>
    %c4 = arith.constant 4 : index
    %c0_10 = arith.constant 0 : index
    %9 = vector.load %arg3[%c4, %c0_10] : memref<8x128xf32, #tpu.memory_space<vmem>>, vector<1x1xf32>
    %c0_11 = arith.constant 0 : index
    %c0_12 = arith.constant 0 : index
    %10 = vector.load %arg1[%c0_11, %c0_12] : memref<128x32xf32, #tpu.memory_space<vmem>>, vector<128x32xf32>
    %cst = arith.constant dense<0.000000e+00> : vector<128x128xf32>
    %11 = tpu.matmul %10, %0, %cst {dimension_numbers = #tpu.dot_dimension_numbers<[1], [0], [0], [1], [0, 0, 1, 1], [], []>} : vector<128x32xf32>, vector<32x128xf32>, vector<128x128xf32> -> vector<128x128xf32>
    %12 = vector.broadcast %5 : vector<1x128xf32> to vector<128x128xf32>
    %13 = arith.addf %11, %12 : vector<128x128xf32>
    %cst_13 = arith.constant 0.000000e+00 : f32
    %14 = vector.broadcast %cst_13 : f32 to vector<128x128xf32>
    %15 = arith.maximumf %13, %14 : vector<128x128xf32>
    %cst_14 = arith.constant dense<0.000000e+00> : vector<128x128xf32>
    %16 = tpu.matmul %15, %1, %cst_14 {dimension_numbers = #tpu.dot_dimension_numbers<[1], [0], [0], [1], [0, 0, 1, 1], [], []>} : vector<128x128xf32>, vector<128x128xf32>, vector<128x128xf32> -> vector<128x128xf32>
    %17 = vector.broadcast %6 : vector<1x128xf32> to vector<128x128xf32>
    %18 = arith.addf %16, %17 : vector<128x128xf32>
    %19 = math.tanh %18 : vector<128x128xf32>
    %cst_15 = arith.constant dense<0.000000e+00> : vector<128x128xf32>
    %20 = tpu.matmul %19, %2, %cst_15 {dimension_numbers = #tpu.dot_dimension_numbers<[1], [0], [0], [1], [0, 0, 1, 1], [], []>} : vector<128x128xf32>, vector<128x128xf32>, vector<128x128xf32> -> vector<128x128xf32>
    %21 = vector.broadcast %7 : vector<1x128xf32> to vector<128x128xf32>
    %22 = arith.addf %20, %21 : vector<128x128xf32>
    %cst_16 = arith.constant 0.000000e+00 : f32
    %23 = vector.broadcast %cst_16 : f32 to vector<128x128xf32>
    %24 = arith.maximumf %22, %23 : vector<128x128xf32>
    %cst_17 = arith.constant dense<0.000000e+00> : vector<128x128xf32>
    %25 = tpu.matmul %24, %3, %cst_17 {dimension_numbers = #tpu.dot_dimension_numbers<[1], [0], [0], [1], [0, 0, 1, 1], [], []>} : vector<128x128xf32>, vector<128x128xf32>, vector<128x128xf32> -> vector<128x128xf32>
    %26 = vector.broadcast %8 : vector<1x128xf32> to vector<128x128xf32>
    %27 = arith.addf %25, %26 : vector<128x128xf32>
    %28 = math.tanh %27 : vector<128x128xf32>
    %cst_18 = arith.constant dense<0.000000e+00> : vector<8x128xf32>
    %29 = tpu.matmul %4, %28, %cst_18 {dimension_numbers = #tpu.dot_dimension_numbers<[1], [1], [0], [0], [0, 0, 1, 0], [], []>} : vector<8x128xf32>, vector<128x128xf32>, vector<8x128xf32> -> vector<8x128xf32>
    %30 = vector.extract_strided_slice %29 {offsets = [0, 0], sizes = [1, 128], strides = [1, 1]} : vector<8x128xf32> to vector<1x128xf32>
    %31 = vector.broadcast %9 : vector<1x1xf32> to vector<1x128xf32>
    %32 = arith.addf %30, %31 : vector<1x128xf32>
    %33 = arith.negf %32 : vector<1x128xf32>
    %34 = math.exp %33 : vector<1x128xf32>
    %cst_19 = arith.constant 1.000000e+00 : f32
    %35 = vector.broadcast %cst_19 : f32 to vector<1x128xf32>
    %36 = arith.addf %35, %34 : vector<1x128xf32>
    %37 = arith.divf %35, %36 : vector<1x128xf32>
    %38 = vector.shape_cast %37 : vector<1x128xf32> to vector<1x1x128xf32>
    %c0_20 = arith.constant 0 : index
    %c0_21 = arith.constant 0 : index
    %c0_22 = arith.constant 0 : index
    %39 = vector.load %arg4[%c0_20, %c0_21, %c0_22] : memref<1x1x128xf32, #tpu.memory_space<vmem>>, vector<1x1x128xf32>
    tpu.vector_store %arg4[%c0_20, %c0_21, %c0_22], %38 {strides = array<i32>} : memref<1x1x128xf32, #tpu.memory_space<vmem>>, vector<1x1x128xf32>,
    return
  }
  func.func @transform_0(%arg0: i32) -> (i32, i32) {
    %c0_i32 = arith.constant 0 : i32
    %c0_i32_0 = arith.constant 0 : i32
    return %arg0, %c0_i32 : i32, i32
  }
  func.func @transform_1(%arg0: i32) -> (i32, i32) {
    %c0_i32 = arith.constant 0 : i32
    %c0_i32_0 = arith.constant 0 : i32
    %c0_i32_1 = arith.constant 0 : i32
    return %c0_i32, %c0_i32_0 : i32, i32
  }
  func.func @transform_2(%arg0: i32) -> (i32, i32) {
    %c0_i32 = arith.constant 0 : i32
    %c0_i32_0 = arith.constant 0 : i32
    %c0_i32_1 = arith.constant 0 : i32
    return %c0_i32, %c0_i32_0 : i32, i32
  }
  func.func @transform_3(%arg0: i32) -> (i32, i32, i32) {
    %c0_i32 = arith.constant 0 : i32
    %c0_i32_0 = arith.constant 0 : i32
    %c0_i32_1 = arith.constant 0 : i32
    return %arg0, %c0_i32, %c0_i32_0 : i32, i32, i32
  }
}

</mosaic_0001>

<bundles_post_ra>
// kernel: tpu_custom_call.1
= control target key start
LH: loop header
LB: loop body
LE: loop exit
PB: predicated region body
PF: predicated region fallthrough
CT: control target
= control target key end

     0   :  { %8 = vsyncpa [#allocation3], 0  ;;  %s1575_s0 = inlined_call_operand.vmem [shape: f32[128,32], index: 0, kind: input, shape index: {}]   ;;  %s1576_s1 = inlined_call_operand.hbm [shape: f32[424,128], index: 1, kind: input, shape index: {}]   ;;  %s1577_s2 = inlined_call_operand.vmem [shape: f32[8,128], index: 2, kind: input, shape index: {}]   ;;  %s1578_s3 = inlined_call_operand.hbm [shape: f32[1,1,128], index: 3, kind: output, shape index: {}]  }
   0x1   :  { %9 = vsyncpa [#allocation4], 0  ;;  %s1419_s12 = smov [#allocation2]  }
   0x2   :  { %s17_s13 = sshll.u32 %s1419_s12, 4  ;;  %s18_s13 = int_to_ptr.vmem [resolvable:$true] %s17_s13 }
   0x3   :  { %s1383_s14 = scalar_lea.vmem %s18_s13, 6784  ;;  %p1388_p1 = scmp.lt.s32.totalorder %s18_s13, %s18_s13 }
   0x4   :  { %p1384_p0 = scmp.ne.s32.totalorder %s18_s13, %s1383_s14  ;;  %p1389_p2 = scmp.lt.s32.totalorder %s1383_s14, %s1383_s14 }
   0x6   :  { %p1390_p3 = por %p1389_p2, %p1388_p1 }
   0x8   :  { %p1391_p4 = pnand %p1390_p3, %p1384_p0 }
   0xa   :  { %1394 = shalt.err (!%p1391_p4)
}
   0xb   :  { %s1420_s15 = smov 128   ;;  %s1421_s16 = smov 8  }
   0xc   :  { %23 = dma.hbm_to_vmem [thread:$0]  %s1576_s1, 6784, %s18_s13, [#allocation3], %s1420_s15, %s1420_s15, %s1421_s16  }
   0xd   :  { %1415 = dma.done.wait [#allocation3], 6784  }
   0xe   :  { %1416 = vsyncadd [#allocation3], 4294960512  ;;  %vm107_vm0 = vcmask 261120   ;;  %v32_v0 = vld [vmem:[#allocation2 + $0x18] sm:$0xff]  ;;  %v31_v1 = vld [vmem:[#allocation2 + $0x10] sm:$0xff]  ;;  %vm1423_vm1 = vmmov 0  }
   0xf   :  { %1064 = vmatprep.subr.mxu1 %v32_v0  ;;  %v87_v2 = vld [vmem:[%s1575_s0] sm:$0xff]  ;;  %v30_v3 = vld [vmem:[#allocation2 + $0x8] sm:$0xff]  ;;  %v48_v6 = vld [vmem:[#allocation2 + $0x98] sm:$0xff] }
  0x10   :  { %1065 = vmatpush3.msra.mxu1 %v32_v0  ;;  %1072 = vmatprep.mubr.msk.f32.mxu1 %vm107_vm0, %v87_v2  ;;  %v29_v4 = vld [vmem:[#allocation2] sm:$0xff]  ;;  %v88_v5 = vld [vmem:[%s1575_s0 + $0x8] sm:$0xff]  ;;  %v89_v7 = vld [vmem:[%s1575_s0 + $0x10] sm:$0xff] }
  0x11   :  { %1066 = vmatprep.subr.mxu1 %v31_v1  ;;  %v47_v8 = vld [vmem:[#allocation2 + $0x90] sm:$0xff]  ;;  %v90_v9 = vld [vmem:[%s1575_s0 + $0x18] sm:$0xff]  ;;  %v46_v10 = vld [vmem:[#allocation2 + $0x88] sm:$0xff] }
  0x12   :  { %1067 = vmatpush3.msra.mxu1 %v31_v1  ;;  %v91_v11 = vld [vmem:[%s1575_s0 + $0x20] sm:$0xff]  ;;  %v92_v13 = vld [vmem:[%s1575_s0 + $0x28] sm:$0xff]  ;;  %v44_v14 = vld [vmem:[#allocation2 + $0x78] sm:$0xff] }
  0x13   :  { %1068 = vmatprep.subr.mxu1 %v30_v3  ;;  %v45_v12 = vld [vmem:[#allocation2 + $0x80] sm:$0xff]  ;;  %v93_v15 = vld [vmem:[%s1575_s0 + $0x30] sm:$0xff]  ;;  %v94_v17 = vld [vmem:[%s1575_s0 + $0x38] sm:$0xff] }
  0x14   :  { %1069 = vmatpush3.msra.mxu1 %v30_v3  ;;  %v43_v16 = vld [vmem:[#allocation2 + $0x70] sm:$0xff]  ;;  %v42_v18 = vld [vmem:[#allocation2 + $0x68] sm:$0xff]  ;;  %v95_v19 = vld [vmem:[%s1575_s0 + $0x40] sm:$0xff] }
  0x15   :  { %1070 = vmatprep.subr.mxu1 %v29_v4  ;;  %v41_v20 = vld [vmem:[#allocation2 + $0x60] sm:$0xff]  ;;  %v96_v21 = vld [vmem:[%s1575_s0 + $0x48] sm:$0xff]  ;;  %v40_v22 = vld [vmem:[#allocation2 + $0x58] sm:$0xff] }
  0x16   :  { %1071 = vmatpush3.msra.mxu1 %v29_v4  ;;  %v97_v23 = vld [vmem:[%s1575_s0 + $0x50] sm:$0xff]  ;;  %v98_v25 = vld [vmem:[%s1575_s0 + $0x58] sm:$0xff]  ;;  %v38_v26 = vld [vmem:[#allocation2 + $0x48] sm:$0xff] }
  0x17   :  { %1073 = vmatmul.mubr.msk.f32.vlgmr.msra.gmra.mxu1 %vm107_vm0, %v88_v5  ;;  %1096 = vmatprep.subr.mxu1 %v48_v6  ;;  %v39_v24 = vld [vmem:[#allocation2 + $0x50] sm:$0xff]  ;;  %v99_v27 = vld [vmem:[%s1575_s0 + $0x60] sm:$0xff]  ;;  %v100_v29 = vld [vmem:[%s1575_s0 + $0x68] sm:$0xff] }
  0x18   :  { %1075 = vmatprep.mubr.msk.f32.mxu1 %vm107_vm0, %v89_v7  ;;  %1097 = vmatpush3.msra.mxu1 %v48_v6  ;;  %v37_v28 = vld [vmem:[#allocation2 + $0x40] sm:$0xff]  ;;  %v36_v30 = vld [vmem:[#allocation2 + $0x38] sm:$0xff]  ;;  %v101_v31 = vld [vmem:[%s1575_s0 + $0x70] sm:$0xff] }
  0x19   :  { %1098 = vmatprep.subr.mxu1 %v47_v8  ;;  %v102_v32 = vld [vmem:[%s1575_s0 + $0x78] sm:$0xff]  ;;  %v35_v33 = vld [vmem:[#allocation2 + $0x30] sm:$0xff]  ;;  %v34_v34 = vld [vmem:[#allocation2 + $0x28] sm:$0xff] }
  0x1a   :  { %1099 = vmatpush3.msra.mxu1 %v47_v8  ;;  %v33_v35 = vld [vmem:[#allocation2 + $0x20] sm:$0xff]  ;;  %v64_v36 = vld [vmem:[#allocation2 + $0x118] sm:$0xff]  ;;  %v63_v37 = vld [vmem:[#allocation2 + $0x110] sm:$0xff] }
  0x1b   :  { %1076 = vmatmul.mubr.msk.f32.gmra.mxu1 %vm107_vm0, %v90_v9  ;;  %1100 = vmatprep.subr.mxu1 %v46_v10  ;;  %v62_v38 = vld [vmem:[#allocation2 + $0x108] sm:$0xff]  ;;  %v61_v39 = vld [vmem:[#allocation2 + $0x100] sm:$0xff]  ;;  %v60_v40 = vld [vmem:[#allocation2 + $0xf8] sm:$0xff] }
  0x1c   :  { %1078 = vmatprep.mubr.msk.f32.mxu1 %vm107_vm0, %v91_v11  ;;  %1101 = vmatpush3.msra.mxu1 %v46_v10  ;;  %v59_v41 = vld [vmem:[#allocation2 + $0xf0] sm:$0xff]  ;;  %v910_v42 = vld [vmem:[%s1577_s2] ss:$0 sm:$0xff] }
  0x1d   :  { %1102 = vmatprep.subr.mxu1 %v45_v12  ;;  %1152 = vmatprep.subr.mxu0 %v64_v36 }
  0x1e   :  { %1103 = vmatpush3.msra.mxu1 %v45_v12  ;;  %1153 = vmatpush3.msra.mxu0 %v64_v36  ;;  %v49_v36 = vld [vmem:[#allocation2 + $0xa0] sm:$0xff] }
  0x1f   :  { %1079 = vmatmul.mubr.msk.f32.gmra.mxu1 %vm107_vm0, %v92_v13  ;;  %1104 = vmatprep.subr.mxu1 %v44_v14 }
  0x20   :  { %1081 = vmatprep.mubr.msk.f32.mxu1 %vm107_vm0, %v93_v15  ;;  %1105 = vmatpush3.msra.mxu1 %v44_v14 }
  0x21   :  { %1106 = vmatprep.subr.mxu1 %v43_v16  ;;  %1154 = vmatprep.subr.mxu0 %v63_v37 }
  0x22   :  { %1107 = vmatpush3.msra.mxu1 %v43_v16  ;;  %1155 = vmatpush3.msra.mxu0 %v63_v37  ;;  %v80_v37 = vld [vmem:[#allocation2 + $0x198] sm:$0xff] }
  0x23   :  { %1082 = vmatmul.mubr.msk.f32.gmra.mxu1 %vm107_vm0, %v94_v17  ;;  %1108 = vmatprep.subr.mxu1 %v42_v18 }
  0x24   :  { %1084 = vmatprep.mubr.msk.f32.mxu1 %vm107_vm0, %v95_v19  ;;  %1109 = vmatpush3.msra.mxu1 %v42_v18 }
  0x25   :  { %1110 = vmatprep.subr.mxu1 %v41_v20  ;;  %1156 = vmatprep.subr.mxu0 %v62_v38 }
  0x26   :  { %1111 = vmatpush3.msra.mxu1 %v41_v20  ;;  %1157 = vmatpush3.msra.mxu0 %v62_v38  ;;  %v79_v38 = vld [vmem:[#allocation2 + $0x190] sm:$0xff] }
  0x27   :  { %1085 = vmatmul.mubr.msk.f32.gmra.mxu1 %vm107_vm0, %v96_v21  ;;  %1112 = vmatprep.subr.mxu1 %v40_v22 }
  0x28   :  { %1087 = vmatprep.mubr.msk.f32.mxu1 %vm107_vm0, %v97_v23  ;;  %1113 = vmatpush3.msra.mxu1 %v40_v22 }
  0x29   :  { %1114 = vmatprep.subr.mxu1 %v39_v24  ;;  %1158 = vmatprep.subr.mxu0 %v61_v39 }
  0x2a   :  { %1115 = vmatpush3.msra.mxu1 %v39_v24  ;;  %1159 = vmatpush3.msra.mxu0 %v61_v39  ;;  %v78_v39 = vld [vmem:[#allocation2 + $0x188] sm:$0xff] }
  0x2b   :  { %1088 = vmatmul.mubr.msk.f32.gmra.mxu1 %vm107_vm0, %v98_v25  ;;  %1116 = vmatprep.subr.mxu1 %v38_v26 }
  0x2c   :  { %1090 = vmatprep.mubr.msk.f32.mxu1 %vm107_vm0, %v99_v27  ;;  %1117 = vmatpush3.msra.mxu1 %v38_v26  ;;  %v58_v27 = vld [vmem:[#allocation2 + $0xe8] sm:$0xff] }
  0x2d   :  { %1118 = vmatprep.subr.mxu1 %v37_v28  ;;  %1160 = vmatprep.subr.mxu0 %v60_v40 }
  0x2e   :  { %1119 = vmatpush3.msra.mxu1 %v37_v28  ;;  %1161 = vmatpush3.msra.mxu0 %v60_v40  ;;  %v57_v28 = vld [vmem:[#allocation2 + $0xe0] sm:$0xff] }
  0x2f   :  { %1091 = vmatmul.mubr.msk.f32.gmra.mxu1 %vm107_vm0, %v100_v29  ;;  %1120 = vmatprep.subr.mxu1 %v36_v30  ;;  %v56_v29 = vld [vmem:[#allocation2 + $0xd8] sm:$0xff]  ;;  %v77_v40 = vld [vmem:[#allocation2 + $0x180] sm:$0xff] }
  0x30   :  { %1093 = vmatprep.mubr.msk.f32.mxu1 %vm107_vm0, %v101_v31  ;;  %1121 = vmatpush3.msra.mxu1 %v36_v30  ;;  %v55_v30 = vld [vmem:[#allocation2 + $0xd0] sm:$0xff]  ;;  %v54_v31 = vld [vmem:[#allocation2 + $0xc8] sm:$0xff] }
  0x31   :  { %1122 = vmatprep.subr.mxu1 %v35_v33  ;;  %1162 = vmatprep.subr.mxu0 %v59_v41 }
  0x32   :  { %1123 = vmatpush3.msra.mxu1 %v35_v33  ;;  %1163 = vmatpush3.msra.mxu0 %v59_v41  ;;  %v52_v33 = vld [vmem:[#allocation2 + $0xb8] sm:$0xff] }
  0x33   :  { %1094 = vmatmul.mubr.msk.f32.gmra.mxu1 %vm107_vm0, %v102_v32  ;;  %1124 = vmatprep.subr.mxu1 %v34_v34  ;;  %v53_v32 = vld [vmem:[#allocation2 + $0xc0] sm:$0xff]  ;;  %v76_v41 = vld [vmem:[#allocation2 + $0x178] sm:$0xff] }
  0x34   :  { %1125 = vmatpush3.msra.mxu1 %v34_v34  ;;  %1164 = vmatprep.subr.mxu0 %v58_v27  ;;  %v51_v34 = vld [vmem:[#allocation2 + $0xb0] sm:$0xff] }
  0x35   :  { %1126 = vmatprep.subr.mxu1 %v33_v35  ;;  %1165 = vmatpush3.msra.mxu0 %v58_v27 }
  0x36   :  { %1127 = vmatpush3.msra.mxu1 %v33_v35  ;;  %1166 = vmatprep.subr.mxu0 %v57_v28  ;;  %v50_v35 = vld [vmem:[#allocation2 + $0xa8] sm:$0xff] }
  0x37   :  { %1167 = vmatpush3.msra.mxu0 %v57_v28  ;;  %1208 = vmatprep.subr.mxu1 %v80_v37 }
  0x38   :  { %1168 = vmatprep.subr.mxu0 %v56_v29 }
  0x39   :  { %1169 = vmatpush3.msra.mxu0 %v56_v29 }
  0x3a   :  { %1170 = vmatprep.subr.mxu0 %v55_v30 }
  0x3b   :  { %1171 = vmatpush3.msra.mxu0 %v55_v30 }
  0x3c   :  { %1172 = vmatprep.subr.mxu0 %v54_v31 }
  0x3d   :  { %1173 = vmatpush3.msra.mxu0 %v54_v31 }
  0x3e   :  { %1174 = vmatprep.subr.mxu0 %v53_v32 }
  0x3f   :  { %1175 = vmatpush3.msra.mxu0 %v53_v32 }
  0x40   :  { %1176 = vmatprep.subr.mxu0 %v52_v33 }
  0x41   :  { %1177 = vmatpush3.msra.mxu0 %v52_v33 }
  0x42   :  { %1178 = vmatprep.subr.mxu0 %v51_v34 }
  0x43   :  { %1179 = vmatpush3.msra.mxu0 %v51_v34 }
  0x44   :  { %1180 = vmatprep.subr.mxu0 %v50_v35 }
  0x45   :  { %1181 = vmatpush3.msra.mxu0 %v50_v35  ;;  %v67_v35 = vld [vmem:[#allocation2 + $0x130] sm:$0xff] }
  0x46   :  { %1182 = vmatprep.subr.mxu0 %v49_v36 }
  0x47   :  { %1183 = vmatpush3.msra.mxu0 %v49_v36  ;;  %v66_v36 = vld [vmem:[#allocation2 + $0x128] sm:$0xff] }
  0xd7   :  { %v1074_v43 = vpop.f32.mrf.mxu1 }
  0xd8   :  { %v228_v44 = vadd.f32 %v1074_v43, %v910_v42  ;;  %v74_v43 = vld [vmem:[#allocation2 + $0x168] sm:$0xff] }
  0xd9   :  { %v222_v45 = vpop.f32.mrf.mxu1 }
  0xda   :  { %v223_v46 = vadd.f32 %v910_v42, %v222_v45  ;;  %v302_v49 = vmax.f32 %v228_v44, 0.0  ;;  %v73_v44 = vld [vmem:[#allocation2 + $0x160] sm:$0xff]  ;;  %v72_v45 = vld [vmem:[#allocation2 + $0x158] sm:$0xff] }
  0xdb   :  { %v1077_v47 = vpop.f32.mrf.mxu1 }
  0xdc   :  { %v301_v48 = vmax.f32 %v223_v46, 0.0  ;;  %v238_v50 = vadd.f32 %v1077_v47, %v910_v42  ;;  %v71_v46 = vld [vmem:[#allocation2 + $0x150] sm:$0xff]  ;;  %v70_v47 = vld [vmem:[#allocation2 + $0x148] sm:$0xff] }
  0xdd   :  { %v232_v51 = vpop.f32.mrf.mxu1 }
  0xde   :  { %v233_v52 = vadd.f32 %v910_v42, %v232_v51  ;;  %1128 = vmatprep.mubr.f32.mxu1 %v301_v48  ;;  %v304_v55 = vmax.f32 %v238_v50, 0.0  ;;  %v69_v48 = vld [vmem:[#allocation2 + $0x140] sm:$0xff] }
  0xdf   :  { %v1080_v53 = vpop.f32.mrf.mxu1  ;;  %1129 = vmatmul.mubr.f32.vlgmr.msra.gmra.mxu1 %v302_v49  ;;  %v68_v49 = vld [vmem:[#allocation2 + $0x138] sm:$0xff]  ;;  %v927_v50 = vld [vmem:[%s1577_s2 + $0x1] ss:$0 sm:$0xff] }
  0xe0   :  { %v303_v54 = vmax.f32 %v233_v52, 0.0  ;;  %v248_v56 = vadd.f32 %v1080_v53, %v910_v42  ;;  %1209 = vmatpush3.msra.mxu1 %v80_v37  ;;  %v65_v37 = vld [vmem:[#allocation2 + $0x120] sm:$0xff] }
  0xe1   :  { %v242_v57 = vpop.f32.mrf.mxu1  ;;  %1210 = vmatprep.subr.mxu1 %v79_v38 }
  0xe2   :  { %v243_v58 = vadd.f32 %v910_v42, %v242_v57  ;;  %1131 = vmatprep.mubr.f32.mxu1 %v303_v54  ;;  %v306_v61 = vmax.f32 %v248_v56, 0.0  ;;  %1211 = vmatpush3.msra.mxu1 %v79_v38  ;;  %v928_v38 = vld [vmem:[%s1577_s2 + $0x2] ss:$0 sm:$0xff] }
  0xe3   :  { %v1083_v59 = vpop.f32.mrf.mxu1  ;;  %1132 = vmatmul.mubr.f32.gmra.mxu1 %v304_v55  ;;  %1212 = vmatprep.subr.mxu1 %v78_v39 }
  0xe4   :  { %v305_v60 = vmax.f32 %v243_v58, 0.0  ;;  %v258_v62 = vadd.f32 %v1083_v59, %v910_v42  ;;  %1213 = vmatpush3.msra.mxu1 %v78_v39 }
  0xe5   :  { %v252_v63 = vpop.f32.mrf.mxu1  ;;  %1214 = vmatprep.subr.mxu1 %v77_v40 }
  0xe6   :  { %v253_v0 = vadd.f32 %v910_v42, %v252_v63  ;;  %1134 = vmatprep.mubr.f32.mxu1 %v305_v60  ;;  %v308_v3 = vmax.f32 %v258_v62, 0.0  ;;  %1215 = vmatpush3.msra.mxu1 %v77_v40 }
  0xe7   :  { %v1086_v1 = vpop.f32.mrf.mxu1  ;;  %1135 = vmatmul.mubr.f32.gmra.mxu1 %v306_v61  ;;  %1216 = vmatprep.subr.mxu1 %v76_v41 }
  0xe8   :  { %v307_v2 = vmax.f32 %v253_v0, 0.0  ;;  %v268_v4 = vadd.f32 %v1086_v1, %v910_v42  ;;  %1217 = vmatpush3.msra.mxu1 %v76_v41 }
  0xe9   :  { %v262_v5 = vpop.f32.mrf.mxu1 }
  0xea   :  { %v263_v6 = vadd.f32 %v910_v42, %v262_v5  ;;  %1137 = vmatprep.mubr.f32.mxu1 %v307_v2  ;;  %v310_v9 = vmax.f32 %v268_v4, 0.0 }
  0xeb   :  { %v1089_v7 = vpop.f32.mrf.mxu1  ;;  %1138 = vmatmul.mubr.f32.gmra.mxu1 %v308_v3 }
  0xec   :  { %v309_v8 = vmax.f32 %v263_v6, 0.0  ;;  %v278_v10 = vadd.f32 %v1089_v7, %v910_v42 }
  0xed   :  { %v272_v11 = vpop.f32.mrf.mxu1 }
  0xee   :  { %v273_v12 = vadd.f32 %v910_v42, %v272_v11  ;;  %1140 = vmatprep.mubr.f32.mxu1 %v309_v8  ;;  %v312_v15 = vmax.f32 %v278_v10, 0.0 }
  0xef   :  { %v1092_v13 = vpop.f32.mrf.mxu1  ;;  %1141 = vmatmul.mubr.f32.gmra.mxu1 %v310_v9 }
  0xf0   :  { %v311_v14 = vmax.f32 %v273_v12, 0.0  ;;  %v288_v16 = vadd.f32 %v1092_v13, %v910_v42 }
  0xf1   :  { %v282_v17 = vpop.f32.mrf.mxu1 }
  0xf2   :  { %v283_v18 = vadd.f32 %v910_v42, %v282_v17  ;;  %1143 = vmatprep.mubr.f32.mxu1 %v311_v14  ;;  %v314_v21 = vmax.f32 %v288_v16, 0.0 }
  0xf3   :  { %v1095_v19 = vpop.f32.mrf.mxu1  ;;  %1144 = vmatmul.mubr.f32.gmra.mxu1 %v312_v15 }
  0xf4   :  { %v313_v20 = vmax.f32 %v283_v18, 0.0  ;;  %v298_v22 = vadd.f32 %v1095_v19, %v910_v42 }
  0xf5   :  { %v292_v23 = vpop.f32.mrf.mxu1 }
  0xf6   :  { %v293_v24 = vadd.f32 %v910_v42, %v292_v23  ;;  %1146 = vmatprep.mubr.f32.mxu1 %v313_v20  ;;  %v316_v26 = vmax.f32 %v298_v22, 0.0  ;;  %v75_v42 = vld [vmem:[#allocation2 + $0x170] sm:$0xff] }
  0xf7   :  { %1147 = vmatmul.mubr.f32.gmra.mxu1 %v314_v21  ;;  %1218 = vmatprep.subr.mxu1 %v75_v42 }
  0xf8   :  { %v315_v25 = vmax.f32 %v293_v24, 0.0  ;;  %1219 = vmatpush3.msra.mxu1 %v75_v42 }
  0xf9   :  { %1220 = vmatprep.subr.mxu1 %v74_v43 }
  0xfa   :  { %1149 = vmatprep.mubr.f32.mxu1 %v315_v25  ;;  %1221 = vmatpush3.msra.mxu1 %v74_v43 }
  0xfb   :  { %1150 = vmatmul.mubr.f32.gmra.mxu1 %v316_v26  ;;  %1222 = vmatprep.subr.mxu1 %v73_v44 }
  0xfc   :  { %1223 = vmatpush3.msra.mxu1 %v73_v44 }
  0xfd   :  { %1224 = vmatprep.subr.mxu1 %v72_v45 }
  0xfe   :  { %1225 = vmatpush3.msra.mxu1 %v72_v45 }
  0xff   :  { %1226 = vmatprep.subr.mxu1 %v71_v46 }
 0x100   :  { %1227 = vmatpush3.msra.mxu1 %v71_v46 }
 0x101   :  { %1228 = vmatprep.subr.mxu1 %v70_v47 }
 0x102   :  { %1229 = vmatpush3.msra.mxu1 %v70_v47 }
 0x103   :  { %1230 = vmatprep.subr.mxu1 %v69_v48 }
 0x104   :  { %1231 = vmatpush3.msra.mxu1 %v69_v48 }
 0x105   :  { %1232 = vmatprep.subr.mxu1 %v68_v49 }
 0x106   :  { %1233 = vmatpush3.msra.mxu1 %v68_v49 }
 0x107   :  { %1234 = vmatprep.subr.mxu1 %v67_v35 }
 0x108   :  { %1235 = vmatpush3.msra.mxu1 %v67_v35 }
 0x109   :  { %1236 = vmatprep.subr.mxu1 %v66_v36 }
 0x10a   :  { %1237 = vmatpush3.msra.mxu1 %v66_v36 }
 0x10b   :  { %1238 = vmatprep.subr.mxu1 %v65_v37 }
 0x10c   :  { %1239 = vmatpush3.msra.mxu1 %v65_v37 }
 0x19f   :  { %v1130_v51 = vpop.f32.mrf.mxu1 }
 0x1a0   :  { %v393_v52 = vadd.f32 %v1130_v51, %v927_v50 }
 0x1a1   :  { %v387_v53 = vpop.f32.mrf.mxu1 }
 0x1a2   :  { %v388_v54 = vadd.f32 %v927_v50, %v387_v53 }
 0x1a3   :  { %v1133_v55 = vpop.f32.mrf.mxu1 }
 0x1a4   :  { %1307 = vtanh.f32 %v388_v54  ;;  %v403_v56 = vadd.f32 %v1133_v55, %v927_v50 }
 0x1a5   :  { %1309 = vtanh.f32 %v393_v52  ;;  %v397_v57 = vpop.f32.mrf.mxu1 }
 0x1a6   :  { %v398_v58 = vadd.f32 %v927_v50, %v397_v57 }
 0x1a7   :  { %v1136_v59 = vpop.f32.mrf.mxu1 }
 0x1a8   :  { %1311 = vtanh.f32 %v398_v58  ;;  %v413_v60 = vadd.f32 %v1136_v59, %v927_v50 }
 0x1a9   :  { %1313 = vtanh.f32 %v403_v56  ;;  %v407_v61 = vpop.f32.mrf.mxu1 }
 0x1aa   :  { %v408_v62 = vadd.f32 %v927_v50, %v407_v61 }
 0x1ab   :  { %v1139_v63 = vpop.f32.mrf.mxu1 }
 0x1ac   :  { %1315 = vtanh.f32 %v408_v62  ;;  %v423_v0 = vadd.f32 %v1139_v63, %v927_v50 }
 0x1ad   :  { %1317 = vtanh.f32 %v413_v60  ;;  %v417_v1 = vpop.f32.mrf.mxu1 }
 0x1ae   :  { %v418_v2 = vadd.f32 %v927_v50, %v417_v1 }
 0x1af   :  { %v1142_v3 = vpop.f32.mrf.mxu1 }
 0x1b0   :  { %1319 = vtanh.f32 %v418_v2  ;;  %v433_v5 = vadd.f32 %v1142_v3, %v927_v50 }
 0x1b1   :  { %v1308_v4 = vpop.eup %1307  ;;  %1321 = vtanh.f32 %v423_v0  ;;  %v427_v6 = vpop.f32.mrf.mxu1 }
 0x1b2   :  { %v1310_v7 = vpop.eup %1309  ;;  %v428_v8 = vadd.f32 %v927_v50, %v427_v6  ;;  %1184 = vmatprep.mubr.f32.mxu0 %v1308_v4 }
 0x1b3   :  { %v1145_v9 = vpop.f32.mrf.mxu1  ;;  %1185 = vmatmul.mubr.f32.vlgmr.msra.gmra.mxu0 %v1310_v7 }
 0x1b4   :  { %1323 = vtanh.f32 %v428_v8  ;;  %v443_v11 = vadd.f32 %v1145_v9, %v927_v50 }
 0x1b5   :  { %v1312_v10 = vpop.eup %1311  ;;  %1325 = vtanh.f32 %v433_v5  ;;  %v437_v12 = vpop.f32.mrf.mxu1 }
 0x1b6   :  { %v1314_v13 = vpop.eup %1313  ;;  %v438_v14 = vadd.f32 %v927_v50, %v437_v12  ;;  %1187 = vmatprep.mubr.f32.mxu0 %v1312_v10 }
 0x1b7   :  { %v1148_v15 = vpop.f32.mrf.mxu1  ;;  %1188 = vmatmul.mubr.f32.gmra.mxu0 %v1314_v13 }
 0x1b8   :  { %1327 = vtanh.f32 %v438_v14  ;;  %v453_v17 = vadd.f32 %v1148_v15, %v927_v50 }
 0x1b9   :  { %v1316_v16 = vpop.eup %1315  ;;  %1329 = vtanh.f32 %v443_v11  ;;  %v447_v18 = vpop.f32.mrf.mxu1 }
 0x1ba   :  { %v1318_v19 = vpop.eup %1317  ;;  %v448_v20 = vadd.f32 %v927_v50, %v447_v18  ;;  %1190 = vmatprep.mubr.f32.mxu0 %v1316_v16 }
 0x1bb   :  { %v1151_v21 = vpop.f32.mrf.mxu1  ;;  %1191 = vmatmul.mubr.f32.gmra.mxu0 %v1318_v19 }
 0x1bc   :  { %1331 = vtanh.f32 %v448_v20  ;;  %v463_v23 = vadd.f32 %v1151_v21, %v927_v50 }
 0x1bd   :  { %v1320_v22 = vpop.eup %1319  ;;  %1333 = vtanh.f32 %v453_v17  ;;  %v457_v24 = vpop.f32.mrf.mxu1 }
 0x1be   :  { %v1322_v25 = vpop.eup %1321  ;;  %v458_v26 = vadd.f32 %v927_v50, %v457_v24  ;;  %1193 = vmatprep.mubr.f32.mxu0 %v1320_v22  ;;  %v86_v24 = vld [vmem:[%s1577_s2 + $0x4] sm:$0x1] }
 0x1bf   :  { %1194 = vmatmul.mubr.f32.gmra.mxu0 %v1322_v25  ;;  %v1424_v25 = vmov 0  }
 0x1c0   :  { %1335 = vtanh.f32 %v458_v26  ;;  %1306 = vset.pattern.permute.xlu0 %v1424_v25 }
 0x1c1   :  { %v1324_v27 = vpop.eup %1323  ;;  %1337 = vtanh.f32 %v463_v23  ;;  %v1422_v23 = vmov 0.0   ;;  %884 = vperm.xlu0 %1306, %v86_v24  }
 0x1c2   :  { %v1326_v28 = vpop.eup %1325  ;;  %1196 = vmatprep.mubr.f32.mxu0 %v1324_v27  ;;  %1264 = vmatprep.subr.mxu0 %v1422_v23 }
 0x1c3   :  { %1197 = vmatmul.mubr.f32.gmra.mxu0 %v1326_v28 }
 0x1c5   :  { %v1328_v29 = vpop.eup %1327 }
 0x1c6   :  { %v1330_v30 = vpop.eup %1329  ;;  %1199 = vmatprep.mubr.f32.mxu0 %v1328_v29 }
 0x1c7   :  { %1200 = vmatmul.mubr.f32.gmra.mxu0 %v1330_v30 }
 0x1c9   :  { %v1332_v31 = vpop.eup %1331 }
 0x1ca   :  { %v1334_v32 = vpop.eup %1333  ;;  %1202 = vmatprep.mubr.f32.mxu0 %v1332_v31 }
 0x1cb   :  { %1203 = vmatmul.mubr.f32.gmra.mxu0 %v1334_v32 }
 0x1cd   :  { %v1336_v33 = vpop.eup %1335 }
 0x1ce   :  { %v1338_v34 = vpop.eup %1337  ;;  %1205 = vmatprep.mubr.f32.mxu0 %v1336_v33 }
 0x1cf   :  { %1206 = vmatmul.mubr.f32.gmra.mxu0 %v1338_v34 }
 0x1d0   :  { %1296 = vmatprep.mubr.msk.f32.mxu0 %vm1423_vm1, %v1422_v23 }
 0x273   :  { %v1186_v39 = vpop.f32.mrf.mxu0 }
 0x274   :  { %v558_v40 = vadd.f32 %v1186_v39, %v928_v38 }
 0x275   :  { %v552_v41 = vpop.f32.mrf.mxu0 }
 0x276   :  { %v553_v42 = vadd.f32 %v928_v38, %v552_v41  ;;  %v632_v45 = vmax.f32 %v558_v40, 0.0  ;;  %v1536_v40 = vld [vmem:[%s1577_s2 + $0x3] ss:$0 sm:$0xff]  ;;  %s1425_s2 = smov [#allocation5]  }
 0x277   :  { %v1189_v43 = vpop.f32.mrf.mxu0  ;;  %s901_s4 = sshll.u32 %s1425_s2, 4  ;;  %s902_s4 = int_to_ptr.vmem [resolvable:$true] %s901_s4 }
 0x278   :  { %v631_v44 = vmax.f32 %v553_v42, 0.0  ;;  %v568_v46 = vadd.f32 %v1189_v43, %v928_v38  ;;  %s1395_s5 = scalar_lea.vmem %s902_s4, 16  ;;  %s1399_s6 = scalar_lea.vmem %s902_s4, 32 }
 0x279   :  { %v562_v47 = vpop.f32.mrf.mxu0  ;;  %p1396_p5 = scmp.ne.s32.totalorder %s902_s4, %s1395_s5  ;;  %p1400_p6 = scmp.lt.s32.totalorder %s902_s4, %s902_s4 }
 0x27a   :  { %v563_v48 = vadd.f32 %v928_v38, %v562_v47  ;;  %1240 = vmatprep.mubr.f32.mxu1 %v631_v44  ;;  %v634_v51 = vmax.f32 %v568_v46, 0.0  ;;  %p1401_p7 = scmp.lt.s32.totalorder %s1399_s6, %s1395_s5 }
 0x27b   :  { %v1192_v49 = vpop.f32.mrf.mxu0  ;;  %1241 = vmatmul.mubr.f32.vlgmr.msra.gmra.mxu1 %v632_v45 }
 0x27c   :  { %v633_v50 = vmax.f32 %v563_v48, 0.0  ;;  %v578_v52 = vadd.f32 %v1192_v49, %v928_v38  ;;  %p1402_p8 = por %p1401_p7, %p1400_p6 }
 0x27d   :  { %v572_v53 = vpop.f32.mrf.mxu0 }
 0x27e   :  { %v573_v54 = vadd.f32 %v928_v38, %v572_v53  ;;  %1243 = vmatprep.mubr.f32.mxu1 %v633_v50  ;;  %v636_v57 = vmax.f32 %v578_v52, 0.0  ;;  %p1403_p9 = pnand %p1402_p8, %p1396_p5 }
 0x27f   :  { %v1195_v55 = vpop.f32.mrf.mxu0  ;;  %1244 = vmatmul.mubr.f32.gmra.mxu1 %v634_v51 }
 0x280   :  { %v635_v56 = vmax.f32 %v573_v54, 0.0  ;;  %v588_v58 = vadd.f32 %v1195_v55, %v928_v38 }
 0x281   :  { %v582_v59 = vpop.f32.mrf.mxu0 }
 0x282   :  { %v583_v60 = vadd.f32 %v928_v38, %v582_v59  ;;  %1246 = vmatprep.mubr.f32.mxu1 %v635_v56  ;;  %v638_v63 = vmax.f32 %v588_v58, 0.0 }
 0x283   :  { %v1198_v61 = vpop.f32.mrf.mxu0  ;;  %1247 = vmatmul.mubr.f32.gmra.mxu1 %v636_v57 }
 0x284   :  { %v637_v62 = vmax.f32 %v583_v60, 0.0  ;;  %v598_v0 = vadd.f32 %v1198_v61, %v928_v38 }
 0x285   :  { %v592_v1 = vpop.f32.mrf.mxu0 }
 0x286   :  { %v593_v2 = vadd.f32 %v928_v38, %v592_v1  ;;  %1249 = vmatprep.mubr.f32.mxu1 %v637_v62  ;;  %v640_v5 = vmax.f32 %v598_v0, 0.0 }
 0x287   :  { %v1201_v3 = vpop.f32.mrf.mxu0  ;;  %1250 = vmatmul.mubr.f32.gmra.mxu1 %v638_v63 }
 0x288   :  { %v639_v4 = vmax.f32 %v593_v2, 0.0  ;;  %v608_v6 = vadd.f32 %v1201_v3, %v928_v38 }
 0x289   :  { %v602_v7 = vpop.f32.mrf.mxu0 }
 0x28a   :  { %v603_v8 = vadd.f32 %v928_v38, %v602_v7  ;;  %1252 = vmatprep.mubr.f32.mxu1 %v639_v4  ;;  %v642_v11 = vmax.f32 %v608_v6, 0.0 }
 0x28b   :  { %v1204_v9 = vpop.f32.mrf.mxu0  ;;  %1253 = vmatmul.mubr.f32.gmra.mxu1 %v640_v5 }
 0x28c   :  { %v641_v10 = vmax.f32 %v603_v8, 0.0  ;;  %v618_v12 = vadd.f32 %v1204_v9, %v928_v38 }
 0x28d   :  { %v612_v13 = vpop.f32.mrf.mxu0 }
 0x28e   :  { %v613_v14 = vadd.f32 %v928_v38, %v612_v13  ;;  %1255 = vmatprep.mubr.f32.mxu1 %v641_v10  ;;  %v644_v17 = vmax.f32 %v618_v12, 0.0  ;;  %v885_v12 = vpop.permute.xlu0 %884 }
 0x28f   :  { %v1207_v15 = vpop.f32.mrf.mxu0  ;;  %1256 = vmatmul.mubr.f32.gmra.mxu1 %v642_v11  ;;  %v81_v11 = vld [vmem:[#allocation2 + $0x1a0] sm:$0xff] }
 0x290   :  { %v643_v16 = vmax.f32 %v613_v14, 0.0  ;;  %v628_v18 = vadd.f32 %v1207_v15, %v928_v38 }
 0x291   :  { %v622_v19 = vpop.f32.mrf.mxu0 }
 0x292   :  { %v623_v20 = vadd.f32 %v928_v38, %v622_v19  ;;  %1258 = vmatprep.mubr.f32.mxu1 %v643_v16  ;;  %v646_v22 = vmax.f32 %v628_v18, 0.0 }
 0x293   :  { %1259 = vmatmul.mubr.f32.gmra.mxu1 %v644_v17 }
 0x294   :  { %v645_v21 = vmax.f32 %v623_v20, 0.0 }
 0x296   :  { %1261 = vmatprep.mubr.f32.mxu1 %v645_v21 }
 0x297   :  { %1262 = vmatmul.mubr.f32.gmra.mxu1 %v646_v22 }
 0x33b   :  { %v1527_v26 = vpop.f32.mrf.mxu1 }
 0x33c   :  { %v723_v3 = vadd.f32 %v1527_v26, %v1536_v40 }
 0x33d   :  { %v1529_v27 = vpop.f32.mrf.mxu1 }
 0x33e   :  { %v718_v5 = vadd.f32 %v1536_v40, %v1529_v27 }
 0x33f   :  { %v1245_v28 = vpop.f32.mrf.mxu1 }
 0x340   :  { %v733_v63 = vadd.f32 %v1245_v28, %v1536_v40 }
 0x341   :  { %v1531_v29 = vpop.f32.mrf.mxu1 }
 0x342   :  { %v728_v1 = vadd.f32 %v1536_v40, %v1531_v29 }
 0x343   :  { %v1248_v30 = vpop.f32.mrf.mxu1 }
 0x344   :  { %v743_v59 = vadd.f32 %v1248_v30, %v1536_v40 }
 0x345   :  { %v737_v31 = vpop.f32.mrf.mxu1 }
 0x346   :  { %v738_v61 = vadd.f32 %v1536_v40, %v737_v31 }
 0x347   :  { %v1251_v32 = vpop.f32.mrf.mxu1 }
 0x348   :  { %v753_v55 = vadd.f32 %v1251_v32, %v1536_v40 }
 0x349   :  { %v747_v33 = vpop.f32.mrf.mxu1 }
 0x34a   :  { %v748_v57 = vadd.f32 %v1536_v40, %v747_v33 }
 0x34b   :  { %v1254_v34 = vpop.f32.mrf.mxu1 }
 0x34c   :  { %v763_v51 = vadd.f32 %v1254_v34, %v1536_v40 }
 0x34d   :  { %v757_v35 = vpop.f32.mrf.mxu1 }
 0x34e   :  { %v758_v53 = vadd.f32 %v1536_v40, %v757_v35 }
 0x34f   :  { %v1257_v36 = vpop.f32.mrf.mxu1 }
 0x350   :  { %v773_v47 = vadd.f32 %v1257_v36, %v1536_v40 }
 0x351   :  { %v767_v37 = vpop.f32.mrf.mxu1 }
 0x352   :  { %v768_v49 = vadd.f32 %v1536_v40, %v767_v37 }
 0x353   :  { %v1260_v38 = vpop.f32.mrf.mxu1 }
 0x354   :  { %v783_v45 = vadd.f32 %v1260_v38, %v1536_v40 }
 0x355   :  { %v777_v39 = vpop.f32.mrf.mxu1 }
 0x356   :  { %v778_v46 = vadd.f32 %v1536_v40, %v777_v39 }
 0x357   :  { %v1263_v41 = vpop.f32.mrf.mxu1 }
 0x358   :  { %v793_v42 = vadd.f32 %v1263_v41, %v1536_v40 }
 0x359   :  { %v787_v43 = vpop.f32.mrf.mxu1 }
 0x35a   :  { %1339 = vtanh.f32 %v793_v42  ;;  %v788_v44 = vadd.f32 %v1536_v40, %v787_v43 }
 0x35c   :  { %1341 = vtanh.f32 %v788_v44 }
 0x35d   :  { %1343 = vtanh.f32 %v783_v45 }
 0x35e   :  { %1345 = vtanh.f32 %v778_v46 }
 0x35f   :  { %1347 = vtanh.f32 %v773_v47 }
 0x360   :  { %1349 = vtanh.f32 %v768_v49 }
 0x361   :  { %1351 = vtanh.f32 %v763_v51 }
 0x362   :  { %1353 = vtanh.f32 %v758_v53 }
 0x363   :  { %1355 = vtanh.f32 %v753_v55 }
 0x364   :  { %1357 = vtanh.f32 %v748_v57 }
 0x365   :  { %1359 = vtanh.f32 %v743_v59 }
 0x366   :  { %1361 = vtanh.f32 %v738_v61 }
 0x367   :  { %v1340_v48 = vpop.eup %1339  ;;  %1363 = vtanh.f32 %v733_v63 }
 0x368   :  { %1265 = vmatpush3.xpose.msra.mxu0 %v1340_v48  ;;  %1365 = vtanh.f32 %v728_v1 }
 0x369   :  { %1266 = vmatprep.subr.mxu0 %v1422_v23  ;;  %v1342_v50 = vpop.eup %1341  ;;  %1367 = vtanh.f32 %v723_v3 }
 0x36a   :  { %v1344_v52 = vpop.eup %1343  ;;  %1369 = vtanh.f32 %v718_v5 }
 0x36b   :  { %v1346_v54 = vpop.eup %1345 }
 0x36c   :  { %1267 = vmatpush3.xpose.msra.mxu0 %v1342_v50  ;;  %v1348_v56 = vpop.eup %1347 }
 0x36d   :  { %1268 = vmatprep.subr.mxu0 %v1422_v23  ;;  %v1350_v58 = vpop.eup %1349 }
 0x36e   :  { %v1352_v60 = vpop.eup %1351 }
 0x36f   :  { %v1354_v62 = vpop.eup %1353 }
 0x370   :  { %1269 = vmatpush3.xpose.msra.mxu0 %v1344_v52  ;;  %v1356_v0 = vpop.eup %1355 }
 0x371   :  { %1270 = vmatprep.subr.mxu0 %v1422_v23  ;;  %v1358_v2 = vpop.eup %1357 }
 0x372   :  { %v1360_v4 = vpop.eup %1359 }
 0x373   :  { %v1362_v6 = vpop.eup %1361 }
 0x374   :  { %1271 = vmatpush3.xpose.msra.mxu0 %v1346_v54  ;;  %v1364_v7 = vpop.eup %1363 }
 0x375   :  { %1272 = vmatprep.subr.mxu0 %v1422_v23  ;;  %v1366_v8 = vpop.eup %1365 }
 0x376   :  { %v1368_v9 = vpop.eup %1367 }
 0x377   :  { %v1370_v10 = vpop.eup %1369 }
 0x378   :  { %1273 = vmatpush3.xpose.msra.mxu0 %v1348_v56 }
 0x379   :  { %1274 = vmatprep.subr.mxu0 %v1422_v23 }
 0x37c   :  { %1275 = vmatpush3.xpose.msra.mxu0 %v1350_v58 }
 0x37d   :  { %1276 = vmatprep.subr.mxu0 %v1422_v23 }
 0x380   :  { %1277 = vmatpush3.xpose.msra.mxu0 %v1352_v60 }
 0x381   :  { %1278 = vmatprep.subr.mxu0 %v1422_v23 }
 0x384   :  { %1279 = vmatpush3.xpose.msra.mxu0 %v1354_v62 }
 0x385   :  { %1280 = vmatprep.subr.mxu0 %v1422_v23 }
 0x388   :  { %1281 = vmatpush3.xpose.msra.mxu0 %v1356_v0 }
 0x389   :  { %1282 = vmatprep.subr.mxu0 %v1422_v23 }
 0x38c   :  { %1283 = vmatpush3.xpose.msra.mxu0 %v1358_v2 }
 0x38d   :  { %1284 = vmatprep.subr.mxu0 %v1422_v23 }
 0x390   :  { %1285 = vmatpush3.xpose.msra.mxu0 %v1360_v4 }
 0x391   :  { %1286 = vmatprep.subr.mxu0 %v1422_v23 }
 0x394   :  { %1287 = vmatpush3.xpose.msra.mxu0 %v1362_v6 }
 0x395   :  { %1288 = vmatprep.subr.mxu0 %v1422_v23 }
 0x398   :  { %1289 = vmatpush3.xpose.msra.mxu0 %v1364_v7 }
 0x399   :  { %1290 = vmatprep.subr.mxu0 %v1422_v23 }
 0x39c   :  { %1291 = vmatpush3.xpose.msra.mxu0 %v1366_v8 }
 0x39d   :  { %1292 = vmatprep.subr.mxu0 %v1422_v23 }
 0x3a0   :  { %1293 = vmatpush3.xpose.msra.mxu0 %v1368_v9 }
 0x3a1   :  { %1294 = vmatprep.subr.mxu0 %v1422_v23 }
 0x3a4   :  { %1295 = vmatpush3.xpose.msra.mxu0 %v1370_v10 }
 0x3a7   :  { %1297 = vmatmul.mubr.f32.vlgmr.msra.gmra.mxu0 %v81_v11 }
 0x467   :  { %v878_v13 = vpop.f32.mrf.mxu0 }
 0x468   :  { %v887_v14 = vadd.f32 %v885_v12, %v878_v13 }
 0x469   :  { %v1298_v15 = vpop.f32.mrf.mxu0 }
 0x46a   :  { %v930_v16 = vmul.f32 -1.442695, %v887_v14 }
 0x46c   :  { %1371 = vpow2.f32 %v930_v16 }
 0x479   :  { %v1372_v17 = vpop.eup %1371 }
 0x47a   :  { %v891_v18 = vadd.f32 1.0, %v1372_v17 }
 0x47c   :  { %1373 = vrcp.f32 %v891_v18 }
 0x489   :  { %v1374_v19 = vpop.eup %1373 }
 0x48a   :  { %894 = vst [vmem:[#allocation5] sm:$0x1] %v1374_v19 }
 0x48b   :  { %1406 = shalt.err (!%p1403_p9)
}
 0x48c   :  { %904 = dma.vmem_to_hbm [thread:$0]  %s902_s4, 16, %s1578_s3, [#allocation4]  }
 0x48d   :  { %1417 = dma.done.wait [#allocation4], 16  }
 0x48e   :  { %1418 = vsyncadd [#allocation4], 4294967280 }
 0x48f   :  { %908 = vsyncpa [#allocation3], 1 }
 0x490   :  { %909 = vsyncpa [#allocation4], 1 }

</bundles_post_ra>
